<compile_context>
chip_gen: v7x
topology: tpu7x:2x2x1
jax: 0.10.0
libtpu: 0.0.40
codegen_flags: <defaults>
</compile_context>

<pallas_src>
import functools

import jax
import jax.numpy as jnp
from jax.experimental import pallas as pl
from jax.experimental.pallas import tpu as pltpu

MAX_SINGLE_K = 4096                 # full-K single-block kernel when K <= this
VMEM_TILE_BUDGET = 20 * 1024 * 1024  # tile working set cap (safe for v7x 64 MiB)
VMEM_LIMIT = 32 * 1024 * 1024        # scoped VMEM limit (<= half of v7x physical)


def _round_up(x, m):
    return (x + m - 1) // m * m


def _activation(y, act):
    if act == "leaky":
        return jnp.maximum(y, 0.2 * y)      # LeakyReLU(0.2), 2 VPU ops
    if act == "relu":
        return jnp.maximum(y, 0.0)
    if act == "tanh":
        return jnp.tanh(y)
    return y


# ---------------------------------------------------------------------------
# Fused Pallas kernels:  out = act(scale * (X @ W) + shift)
#   X, W are bf16 (MXU-native); accumulation and epilogue are f32.
# ---------------------------------------------------------------------------
def _mm_epilogue_kernel_1k(x_ref, w_ref, sc_ref, sh_ref, o_ref, *, act):
    """Single-K-block variant: no accumulator scratch, no pl.when phases."""
    y = jnp.dot(x_ref[...], w_ref[...], preferred_element_type=jnp.float32)
    y = y * sc_ref[...] + sh_ref[...]
    o_ref[...] = _activation(y, act).astype(o_ref.dtype)


def _mm_epilogue_kernel_acc(x_ref, w_ref, sc_ref, sh_ref, o_ref, acc_ref, *, act):
    """Multi-K-block variant (large K): f32 accumulator across the K axis."""
    @pl.when(pl.program_id(2) == 0)
    def _():
        acc_ref[...] = jnp.zeros_like(acc_ref)

    acc_ref[...] += jnp.dot(x_ref[...], w_ref[...],
                            preferred_element_type=jnp.float32)

    @pl.when(pl.program_id(2) == pl.num_programs(2) - 1)
    def _():
        y = acc_ref[...] * sc_ref[...] + sh_ref[...]
        o_ref[...] = _activation(y, act).astype(o_ref.dtype)


def _matmul_epilogue_ref(x, w, sc, sh, act):
    """Plain-XLA twin (same bf16-operand / f32-acc math); also tiny-layer path."""
    y = jnp.dot(x.astype(jnp.bfloat16), w.astype(jnp.bfloat16),
                preferred_element_type=jnp.float32)
    y = y * sc.astype(jnp.float32) + sh.astype(jnp.float32)
    return _activation(y, act)


def _pick_tm(M, vmem_ok):
    """Largest M tile dividing M that fits VMEM, preferring >= 2 M blocks
    (v7x has 2 TensorCores and M is the parallel axis)."""
    cands = [t for t in (2048, 1024, 512, 256, 128) if M % t == 0]
    if not cands:
        cands = [M // 2, M] if (M % 16 == 0 and M >= 32) else [M]
    good = [t for t in cands if vmem_ok(t)]
    if not good:
        good = [min(cands)]
    multi = [t for t in good if M // t >= 2]
    return max(multi) if multi else max(good)


def fused_matmul(x, w, scale, shift, act, out_dtype=jnp.bfloat16):
    """act(scale * (x @ w) + shift); scale/shift broadcast over rows."""
    M, K = x.shape
    _, N = w.shape
    x = x.astype(jnp.bfloat16)
    w = w.astype(jnp.bfloat16)
    sc = scale.reshape(1, -1).astype(jnp.float32)
    sh = shift.reshape(1, -1).astype(jnp.float32)

    # Tiny deep U-Net layers (a handful of pixels AND little work): Pallas
    # per-step overhead + 8/128 row padding would dominate -> plain XLA path.
    use_pallas = (M % 8 == 0) and (M >= 256 or (M >= 64 and K * N >= (1 << 18)))
    if not use_pallas:
        return _matmul_epilogue_ref(x, w, sc, sh, act).astype(out_dtype)

    out_bytes = jnp.dtype(out_dtype).itemsize

    # --- N tiling (lane axis). Full-dim block when N < 128 avoids padding the
    # weight/output and the slice/re-pad round-trips between layers.
    if N < 128:
        TN, Np = N, N
    elif N % 256 == 0:
        TN, Np = 256, N                       # matches v6e/v7x 256-wide MXU
    elif N % 128 == 0:
        TN, Np = 128, N
    else:                                     # rare fallback (unused in this net)
        TN, Np = 128, _round_up(N, 128)

    # --- K tiling. Single full-K block (no padding, no accumulator) whenever
    # it fits; only very large K gets split across a reduction grid axis.
    single_k = K <= MAX_SINGLE_K
    if single_k:
        TK, Kp = K, K
    else:
        Kp = _round_up(K, 128)
        TK = next(t for t in (2048, 1024, 512, 256, 128) if Kp % t == 0)

    # --- M tiling, capped by the VMEM working-set budget (v7x: 64 MiB VMEM).
    def vmem_ok(tm):
        b = 2 * (tm * TK * 2) + 2 * (TK * TN * 2) + 2 * (tm * TN * out_bytes)
        if not single_k:
            b += tm * TN * 4                  # f32 accumulator scratch
        return b <= VMEM_TILE_BUDGET

    TM = _pick_tm(M, vmem_ok)

    # Cheap (weight-only / rare) padding; activations (x) are padded only in
    # the multi-K fallback when K is not already a multiple of 128.
    if Kp != K:
        x = jnp.pad(x, ((0, 0), (0, Kp - K)))
    if (Kp, Np) != (K, N):
        w = jnp.pad(w, ((0, Kp - K), (0, Np - N)))
    if Np != N:
        sc = jnp.pad(sc, ((0, 0), (0, Np - N)))
        sh = jnp.pad(sh, ((0, 0), (0, Np - N)))

    cost = pl.CostEstimate(
        flops=2 * M * Kp * Np,
        transcendentals=M * Np if act == "tanh" else 0,
        bytes_accessed=2 * (M * Kp + Kp * Np) + out_bytes * M * Np)

    if single_k:
        out = pl.pallas_call(
            functools.partial(_mm_epilogue_kernel_1k, act=act),
            out_shape=jax.ShapeDtypeStruct((M, Np), out_dtype),
            grid_spec=pltpu.PrefetchScalarGridSpec(
                num_scalar_prefetch=0,
                grid=(M // TM, Np // TN),
                in_specs=[
                    pl.BlockSpec((TM, TK), lambda i, j: (i, 0)),
                    pl.BlockSpec((TK, TN), lambda i, j: (0, j)),
                    pl.BlockSpec((1, TN), lambda i, j: (0, j)),
                    pl.BlockSpec((1, TN), lambda i, j: (0, j)),
                ],
                out_specs=pl.BlockSpec((TM, TN), lambda i, j: (i, j)),
            ),
            compiler_params=pltpu.CompilerParams(
                dimension_semantics=("parallel", "parallel"),
                vmem_limit_bytes=VMEM_LIMIT),
            cost_estimate=cost,
        )(x, w, sc, sh)
    else:
        out = pl.pallas_call(
            functools.partial(_mm_epilogue_kernel_acc, act=act),
            out_shape=jax.ShapeDtypeStruct((M, Np), out_dtype),
            grid_spec=pltpu.PrefetchScalarGridSpec(
                num_scalar_prefetch=0,
                grid=(M // TM, Np // TN, Kp // TK),
                in_specs=[
                    pl.BlockSpec((TM, TK), lambda i, j, k: (i, k)),
                    pl.BlockSpec((TK, TN), lambda i, j, k: (k, j)),
                    pl.BlockSpec((1, TN), lambda i, j, k: (0, j)),
                    pl.BlockSpec((1, TN), lambda i, j, k: (0, j)),
                ],
                out_specs=pl.BlockSpec((TM, TN), lambda i, j, k: (i, j)),
                scratch_shapes=[pltpu.VMEM((TM, TN), jnp.float32)],
            ),
            compiler_params=pltpu.CompilerParams(
                dimension_semantics=("parallel", "parallel", "arbitrary"),
                vmem_limit_bytes=VMEM_LIMIT),
            cost_estimate=cost,
        )(x, w, sc, sh)

    if Np != N:
        out = out[:, :N]
    return out


# ---------------------------------------------------------------------------
# Conv2d(k=4, s=2, p=1) as bf16 im2col + fused matmul.   x: (N,H,W,C) NHWC
# w: PyTorch layout (Cout, Cin, 4, 4)
# ---------------------------------------------------------------------------
# TODO(synk): move im2col into the kernel (tap loop over the K axis with an
# index_map on a space-to-depth view) to avoid materializing the 16C patches.
def conv_down(x, w, scale, shift, act, pad_mode, out_dtype=jnp.bfloat16):
    N, H, W, C = x.shape
    Cout = w.shape[0]
    OH, OW = H // 2, W // 2
    xp = jnp.pad(x, ((0, 0), (1, 1), (1, 1), (0, 0)), mode=pad_mode)
    cols = [xp[:, kh:kh + 2 * OH:2, kw:kw + 2 * OW:2, :]
            for kh in range(4) for kw in range(4)]
    patches = jnp.stack(cols, axis=3).reshape(N * OH * OW, 16 * C)
    wmat = jnp.transpose(w, (2, 3, 1, 0)).reshape(16 * C, Cout)
    out = fused_matmul(patches, wmat, scale, shift, act, out_dtype)
    return out.reshape(N, OH, OW, Cout)


# ---------------------------------------------------------------------------
# ConvTranspose2d(k=4, s=2, p=1) via 4-phase decomposition.
#   y[n, 2i+ph, 2j+pw, co] = sum_{ci,dh,dw} xpad[n, i+ph+dh, j+pw+dw, ci]
#                                           * w[ci, co, 3-ph-2dh, 3-pw-2dw]
# All four phases are evaluated by one matmul over the shared 3x3 neighbourhood
# (9 taps) with a sparse (9*Cin, 4*Cout) weight, then interleaved to (2H, 2W).
# w: PyTorch layout (Cin, Cout, 4, 4)
# ---------------------------------------------------------------------------
# TODO(synk): fold the phase interleave (reshape+transpose) into the kernel's
# out_specs / the consumer's indexing instead of a standalone XLA pass.
def conv_up(x, w, scale, shift, act, out_dtype=jnp.bfloat16):
    N, H, W, C = x.shape
    Cin, Cout = w.shape[0], w.shape[1]
    xp = jnp.pad(x, ((0, 0), (1, 1), (1, 1), (0, 0)))
    cols = [xp[:, th:th + H, tw:tw + W, :] for th in range(3) for tw in range(3)]
    patches = jnp.stack(cols, axis=3).reshape(N * H * W, 9 * C)

    # Sparse phase weight: tap (th,tw) feeds phase (ph,pw) only when
    # th-ph, tw-pw in {0,1}, with original kernel entry (3-ph-2dh, 3-pw-2dw).
    w9 = jnp.zeros((3, 3, 2, 2, Cin, Cout), w.dtype)
    for ph in range(2):
        for pw in range(2):
            for dh in range(2):
                for dw in range(2):
                    th, tw = ph + dh, pw + dw
                    kh, kw = 3 - ph - 2 * dh, 3 - pw - 2 * dw
                    w9 = w9.at[th, tw, ph, pw].set(w[:, :, kh, kw])
    wmat = jnp.transpose(w9, (0, 1, 4, 2, 3, 5)).reshape(9 * Cin, 4 * Cout)

    out = fused_matmul(patches, wmat, jnp.tile(scale, 4), jnp.tile(shift, 4),
                       act, out_dtype)                     # (N*H*W, 4*Cout)
    out = out.reshape(N, H, W, 2, 2, Cout).transpose(0, 1, 3, 2, 4, 5)
    return out.reshape(N, 2 * H, 2 * W, Cout)


# ---------------------------------------------------------------------------
# Generator configuration & deterministic parameter init
# ---------------------------------------------------------------------------
IN_CH = 3
F = 4  # "features" (64 in the original model); kept small for the test run

DOWN_CFG = [  # name, cin, cout, bias, bn, act, pad_mode
    ("initial",    IN_CH,   F,     True,  False, "leaky", "reflect"),
    ("down1",      F,       2 * F, False, True,  "leaky", "reflect"),
    ("down2",      2 * F,   4 * F, False, True,  "leaky", "reflect"),
    ("down3",      4 * F,   8 * F, False, True,  "leaky", "reflect"),
    ("down4",      8 * F,   8 * F, False, True,  "leaky", "reflect"),
    ("down5",      8 * F,   8 * F, False, True,  "leaky", "reflect"),
    ("down6",      8 * F,   8 * F, False, True,  "leaky", "reflect"),
    ("bottleneck", 8 * F,   8 * F, True,  False, "relu",  "constant"),
]
UP_CFG = [  # name, cin, cout, bias, bn, act
    ("up1",    8 * F,  8 * F, False, True,  "relu"),
    ("up2",   16 * F,  8 * F, False, True,  "relu"),
    ("up3",   16 * F,  8 * F, False, True,  "relu"),
    ("up4",   16 * F,  8 * F, False, True,  "relu"),
    ("up5",   16 * F,  4 * F, False, True,  "relu"),
    ("up6",    8 * F,  2 * F, False, True,  "relu"),
    ("up7",    4 * F,  F,     False, True,  "relu"),
    ("final",  2 * F,  IN_CH, True,  False, "tanh"),
]
DOWN_ACT_PAD = {c[0]: (c[5], c[6]) for c in DOWN_CFG}
UP_ACT = {c[0]: c[5] for c in UP_CFG}


def init_params(key):
    params = {}
    keys = iter(jax.random.split(key, 64))

    def fold_bn(k, cout):
        k1, k2, k3, k4 = jax.random.split(k, 4)
        gamma = 1.0 + 0.1 * jax.random.normal(k1, (cout,), jnp.float32)
        beta = 0.1 * jax.random.normal(k2, (cout,), jnp.float32)
        mean = 0.1 * jax.random.normal(k3, (cout,), jnp.float32)
        var = 1.0 + 0.1 * jnp.abs(jax.random.normal(k4, (cout,), jnp.float32))
        scale = gamma / jnp.sqrt(var + 1e-5)
        shift = beta - mean * scale
        return scale, shift

    def scale_shift(k, cout, bias, bn):
        if bn:
            return fold_bn(k, cout)
        if bias:
            return (jnp.ones((cout,), jnp.float32),
                    0.05 * jax.random.normal(k, (cout,), jnp.float32))
        return jnp.ones((cout,), jnp.float32), jnp.zeros((cout,), jnp.float32)

    for name, cin, cout, bias, bn, _, _ in DOWN_CFG:
        w = 0.05 * jax.random.normal(next(keys), (cout, cin, 4, 4), jnp.float32)
        sc, sh = scale_shift(next(keys), cout, bias, bn)
        params[name] = {"w": w, "scale": sc, "shift": sh}
    for name, cin, cout, bias, bn, _ in UP_CFG:
        w = 0.05 * jax.random.normal(next(keys), (cin, cout, 4, 4), jnp.float32)
        sc, sh = scale_shift(next(keys), cout, bias, bn)
        params[name] = {"w": w, "scale": sc, "shift": sh}
    return params


# ---------------------------------------------------------------------------
# Forward pass (U-Net with skip connections), NCHW in / NCHW out
# ---------------------------------------------------------------------------
@jax.jit
def generator_forward(params, x_nchw):
    x = jnp.transpose(x_nchw, (0, 2, 3, 1)).astype(jnp.bfloat16)  # -> NHWC bf16

    def down(name, h):
        act, pad = DOWN_ACT_PAD[name]
        p = params[name]
        return conv_down(h, p["w"], p["scale"], p["shift"], act, pad)

    def up(name, h, out_dtype=jnp.bfloat16):
        p = params[name]
        return conv_up(h, p["w"], p["scale"], p["shift"], UP_ACT[name], out_dtype)

    d1 = down("initial", x)
    d2 = down("down1", d1)
    d3 = down("down2", d2)
    d4 = down("down3", d3)
    d5 = down("down4", d4)
    d6 = down("down5", d5)
    d7 = down("down6", d6)
    bott = down("bottleneck", d7)

    # Dropout(0.5) in up1-up3 is identity in eval/inference mode.
    # TODO(synk): fuse the skip-concat into the kernel as two K segments /
    # two input refs to avoid one bf16 copy of (u_i, d_j) per up stage.
    u1 = up("up1", bott)
    u2 = up("up2", jnp.concatenate([u1, d7], axis=-1))
    u3 = up("up3", jnp.concatenate([u2, d6], axis=-1))
    u4 = up("up4", jnp.concatenate([u3, d5], axis=-1))
    u5 = up("up5", jnp.concatenate([u4, d4], axis=-1))
    u6 = up("up6", jnp.concatenate([u5, d3], axis=-1))
    u7 = up("up7", jnp.concatenate([u6, d2], axis=-1))
    out = up("final", jnp.concatenate([u7, d1], axis=-1), out_dtype=jnp.float32)
    return jnp.transpose(out, (0, 3, 1, 2))  # -> NCHW


if __name__ == "__main__":
    key = jax.random.PRNGKey(0)
    kp, kx, kt = jax.random.split(key, 3)

    # --- unit check 1: fused Pallas matmul + epilogue vs its XLA twin -------
    # (M=1536, K=200, N=11 exercises the unpadded full-K / full-N block path)
    a = jax.random.normal(kt, (1536, 200), jnp.float32)
    b = jax.random.normal(jax.random.fold_in(kt, 1), (200, 11), jnp.float32)
    sc = jax.random.normal(jax.random.fold_in(kt, 2), (11,), jnp.float32)
    sh = jax.random.normal(jax.random.fold_in(kt, 3), (11,), jnp.float32)
    got = fused_matmul(a, b, sc, sh, "leaky", out_dtype=jnp.float32)
    ref = _matmul_epilogue_ref(a, b, sc.reshape(1, -1), sh.reshape(1, -1), "leaky")
    assert jnp.allclose(got, ref, atol=5e-2, rtol=5e-2), "fused_matmul mismatch"

    # --- unit check 2: 4-phase ConvTranspose2d lowering vs lax reference ----
    kc = jax.random.fold_in(kt, 4)
    xc = jax.random.normal(kc, (1, 32, 32, 8), jnp.float32)   # M=1024 -> Pallas
    wc = 0.05 * jax.random.normal(jax.random.fold_in(kc, 1), (8, 6, 4, 4),
                                  jnp.float32)
    xq = xc.astype(jnp.bfloat16)
    wq = wc.astype(jnp.bfloat16).astype(jnp.float32)
    got_u = conv_up(xq, wq, jnp.ones((6,), jnp.float32),
                    jnp.zeros((6,), jnp.float32), "relu", out_dtype=jnp.float32)
    w_hwio = jnp.transpose(wq[:, :, ::-1, ::-1], (2, 3, 0, 1))
    ref_u = jax.lax.conv_general_dilated(
        xq.astype(jnp.float32), w_hwio, window_strides=(1, 1),
        padding=((2, 2), (2, 2)), lhs_dilation=(2, 2),
        dimension_numbers=("NHWC", "HWIO", "NHWC"))
    ref_u = jnp.maximum(ref_u, 0.0)
    assert got_u.shape == ref_u.shape
    assert jnp.allclose(got_u, ref_u, atol=5e-2, rtol=5e-2), "conv_up mismatch"

    # --- full generator forward ---------------------------------------------
    # Spatial must be 256 so the 8 stride-2 stages bottom out at 1x1 (as the
    # architecture requires); batch / feature width kept small.
    params = init_params(kp)
    x = jax.random.normal(kx, (1, IN_CH, 256, 256), jnp.float32)
    y = generator_forward(params, x)
    y = jax.block_until_ready(y)
    assert y.shape == (1, IN_CH, 256, 256)
    assert bool(jnp.isfinite(y).all())
    print("KERNEL_OK")
</pallas_src>

<mosaic_0001>
module attributes {stable_mosaic.version = 11 : i64} {
  func.func @_mm_epilogue_kernel_1k(%arg0: i32, %arg1: i32, %arg2: memref<512x200xbf16, #tpu.memory_space<vmem>>, %arg3: memref<200x11xbf16, #tpu.memory_space<vmem>>, %arg4: memref<1x11xf32, #tpu.memory_space<vmem>>, %arg5: memref<1x11xf32, #tpu.memory_space<vmem>>, %arg6: memref<512x11xf32, #tpu.memory_space<vmem>>) attributes {dimension_semantics = [#tpu.dimension_semantics<parallel>, #tpu.dimension_semantics<parallel>], iteration_bounds = array<i64: 3, 1>, scalar_prefetch = 0 : i64, scratch_operands = 0 : i64, tpu.core_type = #tpu.core_type<tc>, window_params = [{transform_indices = @transform_0, window_bounds = array<i64: 512, 200>}, {transform_indices = @transform_1, window_bounds = array<i64: 200, 11>}, {transform_indices = @transform_2, window_bounds = array<i64: 1, 11>}, {transform_indices = @transform_3, window_bounds = array<i64: 1, 11>}, {transform_indices = @transform_4, window_bounds = array<i64: 512, 11>}]} {
    %c0 = arith.constant 0 : index
    %c0_0 = arith.constant 0 : index
    %0 = vector.load %arg2[%c0, %c0_0] : memref<512x200xbf16, #tpu.memory_space<vmem>>, vector<512x200xbf16>
    %c0_1 = arith.constant 0 : index
    %c0_2 = arith.constant 0 : index
    %1 = vector.load %arg3[%c0_1, %c0_2] : memref<200x11xbf16, #tpu.memory_space<vmem>>, vector<200x11xbf16>
    %cst = arith.constant dense<0.000000e+00> : vector<512x11xf32>
    %2 = tpu.matmul %0, %1, %cst {dimension_numbers = #tpu.dot_dimension_numbers<[1], [0], [0], [1], [0, 0, 1, 1], [], []>} : vector<512x200xbf16>, vector<200x11xbf16>, vector<512x11xf32> -> vector<512x11xf32>
    %c0_3 = arith.constant 0 : index
    %c0_4 = arith.constant 0 : index
    %3 = vector.load %arg4[%c0_3, %c0_4] : memref<1x11xf32, #tpu.memory_space<vmem>>, vector<1x11xf32>
    %4 = vector.broadcast %3 : vector<1x11xf32> to vector<512x11xf32>
    %5 = arith.mulf %2, %4 : vector<512x11xf32>
    %c0_5 = arith.constant 0 : index
    %c0_6 = arith.constant 0 : index
    %6 = vector.load %arg5[%c0_5, %c0_6] : memref<1x11xf32, #tpu.memory_space<vmem>>, vector<1x11xf32>
    %7 = vector.broadcast %6 : vector<1x11xf32> to vector<512x11xf32>
    %8 = arith.addf %5, %7 : vector<512x11xf32>
    %cst_7 = arith.constant 2.000000e-01 : f32
    %9 = vector.broadcast %cst_7 : f32 to vector<512x11xf32>
    %10 = arith.mulf %9, %8 : vector<512x11xf32>
    %11 = arith.maximumf %8, %10 : vector<512x11xf32>
    %c0_8 = arith.constant 0 : index
    %c0_9 = arith.constant 0 : index
    %12 = vector.load %arg6[%c0_8, %c0_9] : memref<512x11xf32, #tpu.memory_space<vmem>>, vector<512x11xf32>
    tpu.vector_store %arg6[%c0_8, %c0_9], %11 {strides = array<i32>} : memref<512x11xf32, #tpu.memory_space<vmem>>, vector<512x11xf32>,
    return
  }
  func.func @transform_0(%arg0: i32, %arg1: i32) -> (i32, i32) {
    %c0_i32 = arith.constant 0 : i32
    %c0_i32_0 = arith.constant 0 : i32
    return %arg0, %c0_i32 : i32, i32
  }
  func.func @transform_1(%arg0: i32, %arg1: i32) -> (i32, i32) {
    %c0_i32 = arith.constant 0 : i32
    %c0_i32_0 = arith.constant 0 : i32
    return %c0_i32, %arg1 : i32, i32
  }
  func.func @transform_2(%arg0: i32, %arg1: i32) -> (i32, i32) {
    %c0_i32 = arith.constant 0 : i32
    %c0_i32_0 = arith.constant 0 : i32
    return %c0_i32, %arg1 : i32, i32
  }
  func.func @transform_3(%arg0: i32, %arg1: i32) -> (i32, i32) {
    %c0_i32 = arith.constant 0 : i32
    %c0_i32_0 = arith.constant 0 : i32
    return %c0_i32, %arg1 : i32, i32
  }
  func.func @transform_4(%arg0: i32, %arg1: i32) -> (i32, i32) {
    %c0_i32 = arith.constant 0 : i32
    return %arg0, %arg1 : i32, i32
  }
}

</mosaic_0001>

<bundles_post_ra>
// kernel: tpu_custom_call.1
= control target key start
LH: loop header
LB: loop body
LE: loop exit
PB: predicated region body
PF: predicated region fallthrough
CT: control target
= control target key end

     0   :  { %s1898_s15 = smov 0   ;;  %s1900_s16 = smov 0   ;;  %s2369_s0 = inlined_call_operand.vmem [shape: bf16[1536,200], index: 0, kind: input, shape index: {}]   ;;  %s2370_s1 = inlined_call_operand.vmem [shape: bf16[200,11], index: 1, kind: input, shape index: {}]   ;;  %s2371_s2 = inlined_call_operand.vmem [shape: f32[1,11], index: 2, kind: input, shape index: {}]   ;;  %s2372_s3 = inlined_call_operand.vmem [shape: f32[1,11], index: 3, kind: input, shape index: {}]   ;;  %s2373_s4 = inlined_call_operand.vmem [shape: f32[1536,11], index: 4, kind: output, shape index: {}]  }
   0x1   :  { %s1902_s17 = smov 0  }
   0x2 LB: > { %s26_s18 = sadd.s32 1, %s1866_s16  ;;  %p1568_p0 = scmp.ge.s32.totalorder %s1870_s17, 1  ;;  %s1870_s17 = sphi %s1902_s17, %s14_s17   ;;  %s1866_s16 = sphi %s1900_s16, %s2375_s16   ;;  %s1862_s15 = sphi %s1898_s15, %s2374_s15  }
   0x3   : > { %p28_p1 = scmp.ge.s32.totalorder %s26_s18, 3  ;;  %p203_p2 = scmp.lt.s32.totalorder %s1870_s17, 4 }
   0x5   : > { %s2377_s18 = smov (%p28_p1, %s26_s18), 0  ;;  %p204_p3 = pnand %p1568_p0, %p203_p2 }
   0x6   : > { %v1739_v0 = vld [vmem:[%s2370_s1] sm:$0xff] (!%p204_p3)   ;;  %v1872_v1 = vmov (!%p204_p3), 0   ;;  %v1740_v2 = vld [vmem:[%s2370_s1 + $0x8] sm:$0xff] (!%p204_p3)   ;;  %s1569_s23 = sshll.u32 (!%p204_p3), %s1862_s15, 6  ;;  %v1741_v3 = vld [vmem:[%s2370_s1 + $0x10] sm:$0xff] (!%p204_p3)   ;;  %vm722_vm0 = vcmask (!%p204_p3), 588800  }
   0x7   : > { %207 = sbr.rel (%p204_p3) target bundleno = 402 (0x192), region = 36  ;;  %823 = vmatprep.subr.bf16.mxu0 (!%p204_p3), %v1872_v1  ;;  %1688 = vmatprep.subr.bf16.mxu1 (!%p204_p3), %v1872_v1  ;;  %p244_p4 = scmp.lt.s32.totalorder (!%p204_p3), %s1569_s23, 191  ;;  %v1742_v4 = vld [vmem:[%s2370_s1 + $0x18] sm:$0xff] (!%p204_p3)   ;;  %v1743_v6 = vld [vmem:[%s2370_s1 + $0x20] sm:$0xff] (!%p204_p3)   ;;  %v1744_v8 = vld [vmem:[%s2370_s1 + $0x28] sm:$0xff] (!%p204_p3)   ;;  %vm819_vm1 = vcmask (!%p204_p3), 1043456  }
   0x8   : > { %824 = vmatpush1.bf16.msra.mxu0 (!%p204_p3), %v1739_v0  ;;  %1701 = vmatpush1.bf16.msra.mxu1 (!%p204_p3), %v1739_v0  ;;  %v1745_v9 = vld [vmem:[%s2370_s1 + $0x30] sm:$0xff] (!%p204_p3)   ;;  %v1746_v10 = vld [vmem:[%s2370_s1 + $0x38] sm:$0xff] (!%p204_p3)   ;;  %v1747_v11 = vld [vmem:[%s2370_s1 + $0x40] sm:$0xff] (!%p204_p3)   ;;  %vm1382_vm2 = vcmask (!%p204_p3), 89088  }
   0x9   : > { %825 = vmatprep.subr.bf16.mxu0 (!%p204_p3), %v1872_v1  ;;  %1689 = vmatprep.subr.bf16.mxu1 (!%p204_p3), %v1872_v1  ;;  %v1748_v12 = vld [vmem:[%s2370_s1 + $0x48] sm:$0xff] (!%p204_p3)   ;;  %v1749_v13 = vld [vmem:[%s2370_s1 + $0x50] sm:$0xff] (!%p204_p3)   ;;  %v1750_v14 = vld [vmem:[%s2370_s1 + $0x58] sm:$0xff] (!%p204_p3)  }
   0xa   : > { %v1751_v15 = vld [vmem:[%s2370_s1 + $0x60] ss:$0 sps:$4 sm:$0xff] (!%p204_p3)  }
   0xb   : > { %v821_v16 = vsel (!%p204_p3), %vm819_vm1, %v1751_v15, 0  ;;  %v2090_v15 = vld [vmem:[%s2371_s2] ss:$0 sm:$0xff] (!%p204_p3) }
   0xc   : > { %826 = vmatpush1.bf16.msra.mxu0 (!%p204_p3), %v1740_v2  ;;  %1702 = vmatpush1.bf16.msra.mxu1 (!%p204_p3), %v1740_v2 }
   0xd   : > { %827 = vmatprep.subr.bf16.mxu0 (!%p204_p3), %v1872_v1  ;;  %1690 = vmatprep.subr.bf16.mxu1 (!%p204_p3), %v1872_v1 }
   0xe   : > { %s2379_s23 = smov (!%p244_p4, %s1569_s23), 191 }
   0xf   : > { %s1687_s26 = sshll.u32 %s2379_s23, 3 }
  0x10   : > { %828 = vmatpush1.bf16.msra.mxu0 %v1741_v3  ;;  %1703 = vmatpush1.bf16.msra.mxu1 %v1741_v3  ;;  %s1942_s5 = scalar_lea.vmem %s2369_s0, %s1687_s26  ;;  %s2110_s9 = scalar_lea.vmem %s2373_s4, %s1687_s26 }
  0x11   : > { %829 = vmatprep.subr.bf16.mxu0 %v1872_v1  ;;  %1691 = vmatprep.subr.bf16.mxu1 %v1872_v1  ;;  %v1754_v5 = vld [vmem:[%s1942_s5 + $0x4] ss:$8 sps:$4 sm:$0xff]   ;;  %v1752_v17 = vld [vmem:[%s1942_s5] ss:$8 sps:$4 sm:$0xff]   ;;  %v1758_v19 = vld [vmem:[%s1942_s5 + $0x14] ss:$8 sps:$4 sm:$0xff]  }
  0x12   : > { %v1757_v7 = vld [vmem:[%s1942_s5 + $0x104] ss:$8 sps:$4 sm:$0xff]   ;;  %1651 = vmatprep.mubr.msk.bf16.mxu0 %vm722_vm0, %v1754_v5  ;;  %v1755_v18 = vld [vmem:[%s1942_s5 + $0x100] ss:$8 sps:$4 sm:$0xff]   ;;  %v1760_v20 = vld [vmem:[%s1942_s5 + $0x114] ss:$8 sps:$4 sm:$0xff]  }
  0x13   : > { %1667 = vmatprep.mubr.msk.bf16.mxu1 %vm722_vm0, %v1757_v7  ;;  %v1762_v21 = vld [vmem:[%s1942_s5 + $0x10] ss:$8 sps:$4 sm:$0xff]   ;;  %v1764_v23 = vld [vmem:[%s1942_s5 + $0x24] ss:$8 sps:$4 sm:$0xff]   ;;  %v1768_v25 = vld [vmem:[%s1942_s5 + $0x20] ss:$8 sps:$4 sm:$0xff]  }
  0x14   : > { %830 = vmatpush1.bf16.msra.mxu0 %v1742_v4  ;;  %1704 = vmatpush1.bf16.msra.mxu1 %v1742_v4  ;;  %v1763_v22 = vld [vmem:[%s1942_s5 + $0x110] ss:$8 sps:$4 sm:$0xff]   ;;  %v1766_v24 = vld [vmem:[%s1942_s5 + $0x124] ss:$8 sps:$4 sm:$0xff]   ;;  %v1769_v26 = vld [vmem:[%s1942_s5 + $0x120] ss:$8 sps:$4 sm:$0xff]  }
  0x15   : > { %831 = vmatprep.subr.bf16.mxu0 %v1872_v1  ;;  %1692 = vmatprep.subr.bf16.mxu1 %v1872_v1  ;;  %v1770_v27 = vld [vmem:[%s1942_s5 + $0x34] ss:$8 sps:$4 sm:$0xff]   ;;  %v1774_v29 = vld [vmem:[%s1942_s5 + $0x30] ss:$8 sps:$4 sm:$0xff]   ;;  %v1776_v31 = vld [vmem:[%s1942_s5 + $0x44] ss:$8 sps:$4 sm:$0xff]  }
  0x16   : > { %v1772_v28 = vld [vmem:[%s1942_s5 + $0x134] ss:$8 sps:$4 sm:$0xff]   ;;  %v1775_v30 = vld [vmem:[%s1942_s5 + $0x130] ss:$8 sps:$4 sm:$0xff]   ;;  %v1778_v32 = vld [vmem:[%s1942_s5 + $0x144] ss:$8 sps:$4 sm:$0xff]  }
  0x17   : > { %v1780_v33 = vld [vmem:[%s1942_s5 + $0x40] ss:$8 sps:$4 sm:$0xff]   ;;  %v1782_v35 = vld [vmem:[%s1942_s5 + $0x54] ss:$8 sps:$4 sm:$0xff]   ;;  %v1786_v37 = vld [vmem:[%s1942_s5 + $0x50] ss:$8 sps:$4 sm:$0xff]  }
  0x18   : > { %832 = vmatpush1.bf16.msra.mxu0 %v1743_v6  ;;  %1705 = vmatpush1.bf16.msra.mxu1 %v1743_v6  ;;  %v1781_v34 = vld [vmem:[%s1942_s5 + $0x140] ss:$8 sps:$4 sm:$0xff]   ;;  %v1784_v36 = vld [vmem:[%s1942_s5 + $0x154] ss:$8 sps:$4 sm:$0xff]   ;;  %v1787_v38 = vld [vmem:[%s1942_s5 + $0x150] ss:$8 sps:$4 sm:$0xff]  }
  0x19   : > { %833 = vmatprep.subr.bf16.mxu0 %v1872_v1  ;;  %1693 = vmatprep.subr.bf16.mxu1 %v1872_v1  ;;  %v1788_v39 = vld [vmem:[%s1942_s5 + $0x64] ss:$8 sps:$4 sm:$0xff]   ;;  %v1792_v41 = vld [vmem:[%s1942_s5 + $0x60] ss:$8 sps:$4 sm:$0xff]   ;;  %v1794_v43 = vld [vmem:[%s1942_s5 + $0x74] ss:$8 sps:$4 sm:$0xff]  }
  0x1a   : > { %v1790_v40 = vld [vmem:[%s1942_s5 + $0x164] ss:$8 sps:$4 sm:$0xff]   ;;  %v1793_v42 = vld [vmem:[%s1942_s5 + $0x160] ss:$8 sps:$4 sm:$0xff]   ;;  %v1796_v44 = vld [vmem:[%s1942_s5 + $0x174] ss:$8 sps:$4 sm:$0xff]  }
  0x1b   : > { %v1798_v45 = vld [vmem:[%s1942_s5 + $0x70] ss:$8 sps:$4 sm:$0xff]   ;;  %v1800_v47 = vld [vmem:[%s1942_s5 + $0x84] ss:$8 sps:$4 sm:$0xff]   ;;  %v1804_v49 = vld [vmem:[%s1942_s5 + $0x80] ss:$8 sps:$4 sm:$0xff]  }
  0x1c   : > { %834 = vmatpush1.bf16.msra.mxu0 %v1744_v8  ;;  %1706 = vmatpush1.bf16.msra.mxu1 %v1744_v8  ;;  %v1799_v46 = vld [vmem:[%s1942_s5 + $0x170] ss:$8 sps:$4 sm:$0xff]   ;;  %v1802_v48 = vld [vmem:[%s1942_s5 + $0x184] ss:$8 sps:$4 sm:$0xff]   ;;  %v1805_v50 = vld [vmem:[%s1942_s5 + $0x180] ss:$8 sps:$4 sm:$0xff]  }
  0x1d   : > { %835 = vmatprep.subr.bf16.mxu0 %v1872_v1  ;;  %1694 = vmatprep.subr.bf16.mxu1 %v1872_v1  ;;  %v1806_v51 = vld [vmem:[%s1942_s5 + $0x94] ss:$8 sps:$4 sm:$0xff]   ;;  %v1810_v53 = vld [vmem:[%s1942_s5 + $0x90] ss:$8 sps:$4 sm:$0xff]   ;;  %v1812_v55 = vld [vmem:[%s1942_s5 + $0xa4] ss:$8 sps:$4 sm:$0xff]  }
  0x1e   : > { %v1808_v52 = vld [vmem:[%s1942_s5 + $0x194] ss:$8 sps:$4 sm:$0xff]   ;;  %v1811_v54 = vld [vmem:[%s1942_s5 + $0x190] ss:$8 sps:$4 sm:$0xff]   ;;  %v1814_v56 = vld [vmem:[%s1942_s5 + $0x1a4] ss:$8 sps:$4 sm:$0xff]  }
  0x1f   : > { %v1816_v57 = vld [vmem:[%s1942_s5 + $0xa0] ss:$8 sps:$4 sm:$0xff]   ;;  %v1818_v59 = vld [vmem:[%s1942_s5 + $0xb4] ss:$8 sps:$4 sm:$0xff]   ;;  %v1822_v61 = vld [vmem:[%s1942_s5 + $0xb0] ss:$8 sps:$4 sm:$0xff]  }
  0x20   : > { %836 = vmatpush1.bf16.msra.mxu0 %v1745_v9  ;;  %1707 = vmatpush1.bf16.msra.mxu1 %v1745_v9  ;;  %v1817_v58 = vld [vmem:[%s1942_s5 + $0x1a0] ss:$8 sps:$4 sm:$0xff]   ;;  %v1820_v60 = vld [vmem:[%s1942_s5 + $0x1b4] ss:$8 sps:$4 sm:$0xff]   ;;  %v1823_v62 = vld [vmem:[%s1942_s5 + $0x1b0] ss:$8 sps:$4 sm:$0xff]  }
  0x21   : > { %837 = vmatprep.subr.bf16.mxu0 %v1872_v1  ;;  %1695 = vmatprep.subr.bf16.mxu1 %v1872_v1  ;;  %v1824_v63 = vld [vmem:[%s1942_s5 + $0xc4] ss:$8 sps:$4 sm:$0xff]   ;;  %v1829_v2 = vld [vmem:[%s1942_s5 + $0x1c0] ss:$8 sps:$4 sm:$0xff]   ;;  %v1830_v3 = vld [vmem:[%s1942_s5 + $0xd4] ss:$8 sps:$4 sm:$0xff]  }
  0x22   : > { %v1826_v0 = vld [vmem:[%s1942_s5 + $0x1c4] ss:$8 sps:$4 sm:$0xff]   ;;  %v1832_v4 = vld [vmem:[%s1942_s5 + $0x1d4] ss:$8 sps:$4 sm:$0xff]   ;;  %v1834_v5 = vld [vmem:[%s1942_s5 + $0xd0] ss:$8 sps:$4 sm:$0xff]  }
  0x23   : > { %v1835_v6 = vld [vmem:[%s1942_s5 + $0x1d0] ss:$8 sps:$4 sm:$0xff]   ;;  %v1836_v7 = vld [vmem:[%s1942_s5 + $0xe4] ss:$8 sps:$4 sm:$0xff]   ;;  %v1840_v9 = vld [vmem:[%s1942_s5 + $0xe0] ss:$8 sps:$4 sm:$0xff]  }
  0x24   : > { %838 = vmatpush1.bf16.msra.mxu0 %v1746_v10  ;;  %1708 = vmatpush1.bf16.msra.mxu1 %v1746_v10  ;;  %v1838_v8 = vld [vmem:[%s1942_s5 + $0x1e4] ss:$8 sps:$4 sm:$0xff]   ;;  %v1841_v10 = vld [vmem:[%s1942_s5 + $0x1e0] ss:$8 sps:$4 sm:$0xff]  }
  0x25   : > { %839 = vmatprep.subr.bf16.mxu0 %v1872_v1  ;;  %1696 = vmatprep.subr.bf16.mxu1 %v1872_v1 }
  0x28   : > { %840 = vmatpush1.bf16.msra.mxu0 %v1747_v11  ;;  %1709 = vmatpush1.bf16.msra.mxu1 %v1747_v11  ;;  %v1842_v11 = vld [vmem:[%s1942_s5 + $0xf4] ss:$8 sps:$4 sm:$0xff]  }
  0x29   : > { %841 = vmatprep.subr.bf16.mxu0 %v1872_v1  ;;  %1697 = vmatprep.subr.bf16.mxu1 %v1872_v1 }
  0x2c   : > { %842 = vmatpush1.bf16.msra.mxu0 %v1748_v12  ;;  %1710 = vmatpush1.bf16.msra.mxu1 %v1748_v12  ;;  %v1844_v12 = vld [vmem:[%s1942_s5 + $0x1f4] ss:$8 sps:$4 sm:$0xff]  }
  0x2d   : > { %843 = vmatprep.subr.bf16.mxu0 %v1872_v1  ;;  %1698 = vmatprep.subr.bf16.mxu1 %v1872_v1 }
  0x30   : > { %844 = vmatpush1.bf16.msra.mxu0 %v1749_v13  ;;  %1711 = vmatpush1.bf16.msra.mxu1 %v1749_v13  ;;  %v1846_v13 = vld [vmem:[%s1942_s5 + $0xf0] ss:$8 sps:$4 sm:$0xff]  }
  0x31   : > { %845 = vmatprep.subr.bf16.mxu0 %v1872_v1  ;;  %1699 = vmatprep.subr.bf16.mxu1 %v1872_v1 }
  0x34   : > { %846 = vmatpush1.bf16.msra.mxu0 %v1750_v14  ;;  %1712 = vmatpush1.bf16.msra.mxu1 %v1750_v14  ;;  %v1847_v14 = vld [vmem:[%s1942_s5 + $0x1f0] ss:$8 sps:$4 sm:$0xff]  }
  0x35   : > { %847 = vmatprep.subr.bf16.mxu0 %v1872_v1  ;;  %1700 = vmatprep.subr.bf16.mxu1 %v1872_v1  ;;  %v1828_v1 = vld [vmem:[%s1942_s5 + $0xc0] ss:$8 sps:$4 sm:$0xff]  }
  0x38   : > { %848 = vmatpush1.bf16.msra.mxu0 %v821_v16  ;;  %1713 = vmatpush1.bf16.msra.mxu1 %v821_v16 }
  0x3b   : > { %856 = vmatmul.mubr.bf16.vlgmr.msra.gmra.mrb[0].mxu0 %v1752_v17  ;;  %984 = vmatmul.mubr.bf16.vlgmr.msra.gmra.mrb[0].mxu1 %v1755_v18  ;;  %v2095_v17 = vld [vmem:[%s2372_s3] ss:$0 sm:$0xff] }
  0x3c   : > { %1652 = vmatprep.mubr.msk.bf16.mxu0 %vm722_vm0, %v1758_v19  ;;  %1668 = vmatprep.mubr.msk.bf16.mxu1 %vm722_vm0, %v1760_v20 }
  0x43   : > { %864 = vmatmul.mubr.bf16.gmra.mrb[4].mxu0 %v1762_v21  ;;  %992 = vmatmul.mubr.bf16.gmra.mrb[4].mxu1 %v1763_v22 }
  0x44   : > { %1653 = vmatprep.mubr.msk.bf16.mxu0 %vm722_vm0, %v1764_v23  ;;  %1669 = vmatprep.mubr.msk.bf16.mxu1 %vm722_vm0, %v1766_v24 }
  0x4b   : > { %872 = vmatmul.mubr.bf16.gmra.mrb[8].mxu0 %v1768_v25  ;;  %1000 = vmatmul.mubr.bf16.gmra.mrb[8].mxu1 %v1769_v26 }
  0x4c   : > { %1654 = vmatprep.mubr.msk.bf16.mxu0 %vm722_vm0, %v1770_v27  ;;  %1670 = vmatprep.mubr.msk.bf16.mxu1 %vm722_vm0, %v1772_v28 }
  0x53   : > { %880 = vmatmul.mubr.bf16.gmra.mrb[12].mxu0 %v1774_v29  ;;  %1008 = vmatmul.mubr.bf16.gmra.mrb[12].mxu1 %v1775_v30 }
  0x54   : > { %1655 = vmatprep.mubr.msk.bf16.mxu0 %vm722_vm0, %v1776_v31  ;;  %1671 = vmatprep.mubr.msk.bf16.mxu1 %vm722_vm0, %v1778_v32 }
  0x5b   : > { %888 = vmatmul.mubr.bf16.gmra.mrb[16].mxu0 %v1780_v33  ;;  %1016 = vmatmul.mubr.bf16.gmra.mrb[16].mxu1 %v1781_v34 }
  0x5c   : > { %1656 = vmatprep.mubr.msk.bf16.mxu0 %vm722_vm0, %v1782_v35  ;;  %1672 = vmatprep.mubr.msk.bf16.mxu1 %vm722_vm0, %v1784_v36 }
  0x63   : > { %896 = vmatmul.mubr.bf16.gmra.mrb[20].mxu0 %v1786_v37  ;;  %1024 = vmatmul.mubr.bf16.gmra.mrb[20].mxu1 %v1787_v38 }
  0x64   : > { %1657 = vmatprep.mubr.msk.bf16.mxu0 %vm722_vm0, %v1788_v39  ;;  %1673 = vmatprep.mubr.msk.bf16.mxu1 %vm722_vm0, %v1790_v40 }
  0x6b   : > { %904 = vmatmul.mubr.bf16.gmra.mrb[24].mxu0 %v1792_v41  ;;  %1032 = vmatmul.mubr.bf16.gmra.mrb[24].mxu1 %v1793_v42 }
  0x6c   : > { %1658 = vmatprep.mubr.msk.bf16.mxu0 %vm722_vm0, %v1794_v43  ;;  %1674 = vmatprep.mubr.msk.bf16.mxu1 %vm722_vm0, %v1796_v44 }
  0x73   : > { %912 = vmatmul.mubr.bf16.gmra.mrb[28].mxu0 %v1798_v45  ;;  %1040 = vmatmul.mubr.bf16.gmra.mrb[28].mxu1 %v1799_v46 }
  0x74   : > { %1659 = vmatprep.mubr.msk.bf16.mxu0 %vm722_vm0, %v1800_v47  ;;  %1675 = vmatprep.mubr.msk.bf16.mxu1 %vm722_vm0, %v1802_v48 }
  0x7b   : > { %920 = vmatmul.mubr.bf16.gmra.mrb[32].mxu0 %v1804_v49  ;;  %1048 = vmatmul.mubr.bf16.gmra.mrb[32].mxu1 %v1805_v50 }
  0x7c   : > { %1660 = vmatprep.mubr.msk.bf16.mxu0 %vm722_vm0, %v1806_v51  ;;  %1676 = vmatprep.mubr.msk.bf16.mxu1 %vm722_vm0, %v1808_v52 }
  0x83   : > { %928 = vmatmul.mubr.bf16.gmra.mrb[36].mxu0 %v1810_v53  ;;  %1056 = vmatmul.mubr.bf16.gmra.mrb[36].mxu1 %v1811_v54 }
  0x84   : > { %1661 = vmatprep.mubr.msk.bf16.mxu0 %vm722_vm0, %v1812_v55  ;;  %1677 = vmatprep.mubr.msk.bf16.mxu1 %vm722_vm0, %v1814_v56 }
  0x8b   : > { %936 = vmatmul.mubr.bf16.gmra.mrb[40].mxu0 %v1816_v57  ;;  %1064 = vmatmul.mubr.bf16.gmra.mrb[40].mxu1 %v1817_v58 }
  0x8c   : > { %1662 = vmatprep.mubr.msk.bf16.mxu0 %vm722_vm0, %v1818_v59  ;;  %1678 = vmatprep.mubr.msk.bf16.mxu1 %vm722_vm0, %v1820_v60 }
  0x93   : > { %944 = vmatmul.mubr.bf16.gmra.mrb[44].mxu0 %v1822_v61  ;;  %1072 = vmatmul.mubr.bf16.gmra.mrb[44].mxu1 %v1823_v62 }
  0x94   : > { %1663 = vmatprep.mubr.msk.bf16.mxu0 %vm722_vm0, %v1824_v63  ;;  %1679 = vmatprep.mubr.msk.bf16.mxu1 %vm722_vm0, %v1826_v0 }
  0x9b   : > { %952 = vmatmul.mubr.bf16.gmra.mrb[48].mxu0 %v1828_v1  ;;  %1080 = vmatmul.mubr.bf16.gmra.mrb[48].mxu1 %v1829_v2 }
  0x9c   : > { %1664 = vmatprep.mubr.msk.bf16.mxu0 %vm722_vm0, %v1830_v3  ;;  %1680 = vmatprep.mubr.msk.bf16.mxu1 %vm722_vm0, %v1832_v4 }
  0xa3   : > { %960 = vmatmul.mubr.bf16.gmra.mrb[52].mxu0 %v1834_v5  ;;  %1088 = vmatmul.mubr.bf16.gmra.mrb[52].mxu1 %v1835_v6 }
  0xa4   : > { %1665 = vmatprep.mubr.msk.bf16.mxu0 %vm722_vm0, %v1836_v7  ;;  %1681 = vmatprep.mubr.msk.bf16.mxu1 %vm722_vm0, %v1838_v8 }
  0xab   : > { %968 = vmatmul.mubr.bf16.gmra.mrb[56].mxu0 %v1840_v9  ;;  %1096 = vmatmul.mubr.bf16.gmra.mrb[56].mxu1 %v1841_v10 }
  0xac   : > { %1666 = vmatprep.mubr.msk.bf16.mxu0 %vm722_vm0, %v1842_v11  ;;  %1682 = vmatprep.mubr.msk.bf16.mxu1 %vm722_vm0, %v1844_v12 }
  0xb3   : > { %976 = vmatmul.mubr.bf16.gmra.mrb[60].mxu0 %v1846_v13  ;;  %1104 = vmatmul.mubr.bf16.gmra.mrb[60].mxu1 %v1847_v14 }
 0x10e   : > { %v857_v16 = vpop.f32.mrb[0].mxu0  ;;  %v985_v18 = vpop.f32.mrb[0].mxu1 }
 0x10f   : > { %v1119_v19 = vmul.f32 %v2090_v15, %v857_v16  ;;  %v1151_v20 = vmul.f32 %v2090_v15, %v985_v18  ;;  %v859_v21 = vpop.f32.mrb[1].mxu0  ;;  %v987_v22 = vpop.f32.mrb[1].mxu1 }
 0x110   : > { %v860_v23 = vpop.f32.mrb[2].mxu0  ;;  %v988_v24 = vpop.f32.mrb[2].mxu1 }
 0x111   : > { %v1190_v25 = vadd.f32 %v2095_v17, %v1119_v19  ;;  %v1222_v26 = vadd.f32 %v2095_v17, %v1151_v20  ;;  %v1120_v27 = vmul.f32 %v2090_v15, %v860_v23  ;;  %v1152_v28 = vmul.f32 %v2090_v15, %v988_v24  ;;  %v862_v29 = vpop.f32.mrb[3].mxu0  ;;  %v990_v30 = vpop.f32.mrb[3].mxu1 }
 0x113   : > { %v1254_v31 = vmul.f32 0.2, %v1190_v25  ;;  %v1286_v32 = vmul.f32 0.2, %v1222_v26  ;;  %v1191_v33 = vadd.f32 %v2095_v17, %v1120_v27  ;;  %v1223_v34 = vadd.f32 %v2095_v17, %v1152_v28 }
 0x115   : > { %v1318_v35 = vmax.f32 %v1190_v25, %v1254_v31  ;;  %v1350_v36 = vmax.f32 %v1222_v26, %v1286_v32  ;;  %v1255_v37 = vmul.f32 0.2, %v1191_v33  ;;  %v1287_v38 = vmul.f32 0.2, %v1223_v34 }
 0x116   : > { %v865_v39 = vpop.f32.mrb[4].mxu0  ;;  %v993_v40 = vpop.f32.mrb[4].mxu1 }
 0x117   : > { %1383 = vst.msk [vmem:[%s2110_s9] sm:$0xff] %vm1382_vm2, %v1318_v35  ;;  %1415 = vst.msk [vmem:[%s2110_s9 + $0x100] sm:$0xff] %vm1382_vm2, %v1350_v36  ;;  %v1319_v41 = vmax.f32 %v1191_v33, %v1255_v37  ;;  %v1351_v42 = vmax.f32 %v1223_v34, %v1287_v38  ;;  %v1121_v43 = vmul.f32 %v2090_v15, %v865_v39  ;;  %v867_v45 = vpop.f32.mrb[5].mxu0  ;;  %v995_v46 = vpop.f32.mrb[5].mxu1 }
 0x118   : > { %v1153_v44 = vmul.f32 %v2090_v15, %v993_v40  ;;  %v868_v47 = vpop.f32.mrb[6].mxu0  ;;  %v996_v48 = vpop.f32.mrb[6].mxu1 }
 0x119   : > { %1384 = vst.msk [vmem:[%s2110_s9 + $0x8] sm:$0xff] %vm1382_vm2, %v1319_v41  ;;  %1416 = vst.msk [vmem:[%s2110_s9 + $0x108] sm:$0xff] %vm1382_vm2, %v1351_v42  ;;  %v1192_v49 = vadd.f32 %v2095_v17, %v1121_v43  ;;  %v1122_v51 = vmul.f32 %v2090_v15, %v868_v47  ;;  %v1154_v52 = vmul.f32 %v2090_v15, %v996_v48  ;;  %v870_v53 = vpop.f32.mrb[7].mxu0  ;;  %v998_v54 = vpop.f32.mrb[7].mxu1 }
 0x11a   : > { %v1224_v50 = vadd.f32 %v2095_v17, %v1153_v44 }
 0x11b   : > { %v1256_v55 = vmul.f32 0.2, %v1192_v49  ;;  %v1193_v57 = vadd.f32 %v2095_v17, %v1122_v51  ;;  %v1225_v58 = vadd.f32 %v2095_v17, %v1154_v52 }
 0x11c   : > { %v1288_v56 = vmul.f32 0.2, %v1224_v50 }
 0x11d   : > { %v1320_v59 = vmax.f32 %v1192_v49, %v1256_v55  ;;  %v1257_v61 = vmul.f32 0.2, %v1193_v57  ;;  %v1289_v62 = vmul.f32 0.2, %v1225_v58 }
 0x11e   : > { %v1352_v60 = vmax.f32 %v1224_v50, %v1288_v56  ;;  %v873_v63 = vpop.f32.mrb[8].mxu0  ;;  %v1001_v0 = vpop.f32.mrb[8].mxu1 }
 0x11f   : > { %1385 = vst.msk [vmem:[%s2110_s9 + $0x10] sm:$0xff] %vm1382_vm2, %v1320_v59  ;;  %v1321_v1 = vmax.f32 %v1193_v57, %v1257_v61  ;;  %v1353_v2 = vmax.f32 %v1225_v58, %v1289_v62  ;;  %v1123_v3 = vmul.f32 %v2090_v15, %v873_v63  ;;  %v1155_v4 = vmul.f32 %v2090_v15, %v1001_v0  ;;  %v875_v5 = vpop.f32.mrb[9].mxu0  ;;  %v1003_v6 = vpop.f32.mrb[9].mxu1 }
 0x120   : > { %1417 = vst.msk [vmem:[%s2110_s9 + $0x110] sm:$0xff] %vm1382_vm2, %v1352_v60  ;;  %v876_v7 = vpop.f32.mrb[10].mxu0  ;;  %v1004_v8 = vpop.f32.mrb[10].mxu1 }
 0x121   : > { %1386 = vst.msk [vmem:[%s2110_s9 + $0x18] sm:$0xff] %vm1382_vm2, %v1321_v1  ;;  %1418 = vst.msk [vmem:[%s2110_s9 + $0x118] sm:$0xff] %vm1382_vm2, %v1353_v2  ;;  %v1194_v9 = vadd.f32 %v2095_v17, %v1123_v3  ;;  %v1226_v10 = vadd.f32 %v2095_v17, %v1155_v4  ;;  %v1124_v11 = vmul.f32 %v2090_v15, %v876_v7  ;;  %v878_v13 = vpop.f32.mrb[11].mxu0  ;;  %v1006_v14 = vpop.f32.mrb[11].mxu1 }
 0x122   : > { %v1156_v12 = vmul.f32 %v2090_v15, %v1004_v8 }
 0x123   : > { %v1258_v16 = vmul.f32 0.2, %v1194_v9  ;;  %v1290_v18 = vmul.f32 0.2, %v1226_v10  ;;  %v1195_v19 = vadd.f32 %v2095_v17, %v1124_v11 }
 0x124   : > { %v1227_v20 = vadd.f32 %v2095_v17, %v1156_v12 }
 0x125   : > { %v1322_v21 = vmax.f32 %v1194_v9, %v1258_v16  ;;  %v1354_v22 = vmax.f32 %v1226_v10, %v1290_v18  ;;  %v1259_v23 = vmul.f32 0.2, %v1195_v19 }
 0x126   : > { %v1291_v24 = vmul.f32 0.2, %v1227_v20  ;;  %v881_v25 = vpop.f32.mrb[12].mxu0  ;;  %v1009_v26 = vpop.f32.mrb[12].mxu1 }
 0x127   : > { %1387 = vst.msk [vmem:[%s2110_s9 + $0x20] sm:$0xff] %vm1382_vm2, %v1322_v21  ;;  %1419 = vst.msk [vmem:[%s2110_s9 + $0x120] sm:$0xff] %vm1382_vm2, %v1354_v22  ;;  %v1323_v27 = vmax.f32 %v1195_v19, %v1259_v23  ;;  %v1125_v29 = vmul.f32 %v2090_v15, %v881_v25  ;;  %v1157_v30 = vmul.f32 %v2090_v15, %v1009_v26  ;;  %v883_v31 = vpop.f32.mrb[13].mxu0  ;;  %v1011_v32 = vpop.f32.mrb[13].mxu1 }
 0x128   : > { %v1355_v28 = vmax.f32 %v1227_v20, %v1291_v24  ;;  %v884_v33 = vpop.f32.mrb[14].mxu0  ;;  %v1012_v34 = vpop.f32.mrb[14].mxu1 }
 0x129   : > { %1388 = vst.msk [vmem:[%s2110_s9 + $0x28] sm:$0xff] %vm1382_vm2, %v1323_v27  ;;  %v1196_v35 = vadd.f32 %v2095_v17, %v1125_v29  ;;  %v1228_v36 = vadd.f32 %v2095_v17, %v1157_v30  ;;  %v1126_v37 = vmul.f32 %v2090_v15, %v884_v33  ;;  %v1158_v38 = vmul.f32 %v2090_v15, %v1012_v34  ;;  %v886_v39 = vpop.f32.mrb[15].mxu0  ;;  %v1014_v40 = vpop.f32.mrb[15].mxu1 }
 0x12a   : > { %1420 = vst.msk [vmem:[%s2110_s9 + $0x128] sm:$0xff] %vm1382_vm2, %v1355_v28 }
 0x12b   : > { %v1260_v41 = vmul.f32 0.2, %v1196_v35  ;;  %v1292_v42 = vmul.f32 0.2, %v1228_v36  ;;  %v1197_v43 = vadd.f32 %v2095_v17, %v1126_v37  ;;  %v1229_v44 = vadd.f32 %v2095_v17, %v1158_v38 }
 0x12d   : > { %v1324_v45 = vmax.f32 %v1196_v35, %v1260_v41  ;;  %v1356_v46 = vmax.f32 %v1228_v36, %v1292_v42  ;;  %v1261_v47 = vmul.f32 0.2, %v1197_v43  ;;  %v1293_v48 = vmul.f32 0.2, %v1229_v44 }
 0x12e   : > { %v889_v49 = vpop.f32.mrb[16].mxu0  ;;  %v1017_v50 = vpop.f32.mrb[16].mxu1 }
 0x12f   : > { %1389 = vst.msk [vmem:[%s2110_s9 + $0x30] sm:$0xff] %vm1382_vm2, %v1324_v45  ;;  %1421 = vst.msk [vmem:[%s2110_s9 + $0x130] sm:$0xff] %vm1382_vm2, %v1356_v46  ;;  %v1325_v51 = vmax.f32 %v1197_v43, %v1261_v47  ;;  %v1357_v52 = vmax.f32 %v1229_v44, %v1293_v48  ;;  %v1127_v53 = vmul.f32 %v2090_v15, %v889_v49  ;;  %v891_v55 = vpop.f32.mrb[17].mxu0  ;;  %v1019_v56 = vpop.f32.mrb[17].mxu1 }
 0x130   : > { %v1159_v54 = vmul.f32 %v2090_v15, %v1017_v50  ;;  %v892_v57 = vpop.f32.mrb[18].mxu0  ;;  %v1020_v58 = vpop.f32.mrb[18].mxu1 }
 0x131   : > { %1390 = vst.msk [vmem:[%s2110_s9 + $0x38] sm:$0xff] %vm1382_vm2, %v1325_v51  ;;  %1422 = vst.msk [vmem:[%s2110_s9 + $0x138] sm:$0xff] %vm1382_vm2, %v1357_v52  ;;  %v1198_v59 = vadd.f32 %v2095_v17, %v1127_v53  ;;  %v1128_v61 = vmul.f32 %v2090_v15, %v892_v57  ;;  %v1160_v62 = vmul.f32 %v2090_v15, %v1020_v58  ;;  %v894_v63 = vpop.f32.mrb[19].mxu0  ;;  %v1022_v0 = vpop.f32.mrb[19].mxu1 }
 0x132   : > { %v1230_v60 = vadd.f32 %v2095_v17, %v1159_v54 }
 0x133   : > { %v1262_v1 = vmul.f32 0.2, %v1198_v59  ;;  %v1199_v3 = vadd.f32 %v2095_v17, %v1128_v61  ;;  %v1231_v4 = vadd.f32 %v2095_v17, %v1160_v62 }
 0x134   : > { %v1294_v2 = vmul.f32 0.2, %v1230_v60 }
 0x135   : > { %v1326_v5 = vmax.f32 %v1198_v59, %v1262_v1  ;;  %v1263_v7 = vmul.f32 0.2, %v1199_v3  ;;  %v1295_v8 = vmul.f32 0.2, %v1231_v4 }
 0x136   : > { %v1358_v6 = vmax.f32 %v1230_v60, %v1294_v2  ;;  %v897_v9 = vpop.f32.mrb[20].mxu0  ;;  %v1025_v10 = vpop.f32.mrb[20].mxu1 }
 0x137   : > { %1391 = vst.msk [vmem:[%s2110_s9 + $0x40] sm:$0xff] %vm1382_vm2, %v1326_v5  ;;  %v1327_v11 = vmax.f32 %v1199_v3, %v1263_v7  ;;  %v1359_v12 = vmax.f32 %v1231_v4, %v1295_v8  ;;  %v1129_v13 = vmul.f32 %v2090_v15, %v897_v9  ;;  %v1161_v14 = vmul.f32 %v2090_v15, %v1025_v10  ;;  %v899_v16 = vpop.f32.mrb[21].mxu0  ;;  %v1027_v18 = vpop.f32.mrb[21].mxu1 }
 0x138   : > { %1423 = vst.msk [vmem:[%s2110_s9 + $0x140] sm:$0xff] %vm1382_vm2, %v1358_v6  ;;  %v900_v19 = vpop.f32.mrb[22].mxu0  ;;  %v1028_v20 = vpop.f32.mrb[22].mxu1 }
 0x139   : > { %1392 = vst.msk [vmem:[%s2110_s9 + $0x48] sm:$0xff] %vm1382_vm2, %v1327_v11  ;;  %1424 = vst.msk [vmem:[%s2110_s9 + $0x148] sm:$0xff] %vm1382_vm2, %v1359_v12  ;;  %v1200_v21 = vadd.f32 %v2095_v17, %v1129_v13  ;;  %v1232_v22 = vadd.f32 %v2095_v17, %v1161_v14  ;;  %v1130_v23 = vmul.f32 %v2090_v15, %v900_v19  ;;  %v902_v25 = vpop.f32.mrb[23].mxu0  ;;  %v1030_v26 = vpop.f32.mrb[23].mxu1 }
 0x13a   : > { %v1162_v24 = vmul.f32 %v2090_v15, %v1028_v20 }
 0x13b   : > { %v1264_v27 = vmul.f32 0.2, %v1200_v21  ;;  %v1296_v28 = vmul.f32 0.2, %v1232_v22  ;;  %v1201_v29 = vadd.f32 %v2095_v17, %v1130_v23 }
 0x13c   : > { %v1233_v30 = vadd.f32 %v2095_v17, %v1162_v24 }
 0x13d   : > { %v1328_v31 = vmax.f32 %v1200_v21, %v1264_v27  ;;  %v1360_v32 = vmax.f32 %v1232_v22, %v1296_v28  ;;  %v1265_v33 = vmul.f32 0.2, %v1201_v29 }
 0x13e   : > { %v1297_v34 = vmul.f32 0.2, %v1233_v30  ;;  %v905_v35 = vpop.f32.mrb[24].mxu0  ;;  %v1033_v36 = vpop.f32.mrb[24].mxu1 }
 0x13f   : > { %1393 = vst.msk [vmem:[%s2110_s9 + $0x50] sm:$0xff] %vm1382_vm2, %v1328_v31  ;;  %1425 = vst.msk [vmem:[%s2110_s9 + $0x150] sm:$0xff] %vm1382_vm2, %v1360_v32  ;;  %v1329_v37 = vmax.f32 %v1201_v29, %v1265_v33  ;;  %v1131_v39 = vmul.f32 %v2090_v15, %v905_v35  ;;  %v1163_v40 = vmul.f32 %v2090_v15, %v1033_v36  ;;  %v907_v41 = vpop.f32.mrb[25].mxu0  ;;  %v1035_v42 = vpop.f32.mrb[25].mxu1 }
 0x140   : > { %v1361_v38 = vmax.f32 %v1233_v30, %v1297_v34  ;;  %v908_v43 = vpop.f32.mrb[26].mxu0  ;;  %v1036_v44 = vpop.f32.mrb[26].mxu1 }
 0x141   : > { %1394 = vst.msk [vmem:[%s2110_s9 + $0x58] sm:$0xff] %vm1382_vm2, %v1329_v37  ;;  %v1202_v45 = vadd.f32 %v2095_v17, %v1131_v39  ;;  %v1234_v46 = vadd.f32 %v2095_v17, %v1163_v40  ;;  %v1132_v47 = vmul.f32 %v2090_v15, %v908_v43  ;;  %v1164_v48 = vmul.f32 %v2090_v15, %v1036_v44  ;;  %v910_v49 = vpop.f32.mrb[27].mxu0  ;;  %v1038_v50 = vpop.f32.mrb[27].mxu1 }
 0x142   : > { %1426 = vst.msk [vmem:[%s2110_s9 + $0x158] sm:$0xff] %vm1382_vm2, %v1361_v38 }
 0x143   : > { %v1266_v51 = vmul.f32 0.2, %v1202_v45  ;;  %v1298_v52 = vmul.f32 0.2, %v1234_v46  ;;  %v1203_v53 = vadd.f32 %v2095_v17, %v1132_v47  ;;  %v1235_v54 = vadd.f32 %v2095_v17, %v1164_v48 }
 0x145   : > { %v1330_v55 = vmax.f32 %v1202_v45, %v1266_v51  ;;  %v1362_v56 = vmax.f32 %v1234_v46, %v1298_v52  ;;  %v1267_v57 = vmul.f32 0.2, %v1203_v53  ;;  %v1299_v58 = vmul.f32 0.2, %v1235_v54 }
 0x146   : > { %v913_v59 = vpop.f32.mrb[28].mxu0  ;;  %v1041_v60 = vpop.f32.mrb[28].mxu1 }
 0x147   : > { %1395 = vst.msk [vmem:[%s2110_s9 + $0x60] sm:$0xff] %vm1382_vm2, %v1330_v55  ;;  %1427 = vst.msk [vmem:[%s2110_s9 + $0x160] sm:$0xff] %vm1382_vm2, %v1362_v56  ;;  %v1331_v61 = vmax.f32 %v1203_v53, %v1267_v57  ;;  %v1363_v62 = vmax.f32 %v1235_v54, %v1299_v58  ;;  %v1133_v63 = vmul.f32 %v2090_v15, %v913_v59  ;;  %v915_v1 = vpop.f32.mrb[29].mxu0  ;;  %v1043_v2 = vpop.f32.mrb[29].mxu1 }
 0x148   : > { %v1165_v0 = vmul.f32 %v2090_v15, %v1041_v60  ;;  %v916_v3 = vpop.f32.mrb[30].mxu0  ;;  %v1044_v4 = vpop.f32.mrb[30].mxu1 }
 0x149   : > { %1396 = vst.msk [vmem:[%s2110_s9 + $0x68] sm:$0xff] %vm1382_vm2, %v1331_v61  ;;  %1428 = vst.msk [vmem:[%s2110_s9 + $0x168] sm:$0xff] %vm1382_vm2, %v1363_v62  ;;  %v1204_v5 = vadd.f32 %v2095_v17, %v1133_v63  ;;  %v1134_v7 = vmul.f32 %v2090_v15, %v916_v3  ;;  %v1166_v8 = vmul.f32 %v2090_v15, %v1044_v4  ;;  %v918_v9 = vpop.f32.mrb[31].mxu0  ;;  %v1046_v10 = vpop.f32.mrb[31].mxu1 }
 0x14a   : > { %v1236_v6 = vadd.f32 %v2095_v17, %v1165_v0 }
 0x14b   : > { %v1268_v11 = vmul.f32 0.2, %v1204_v5  ;;  %v1205_v13 = vadd.f32 %v2095_v17, %v1134_v7  ;;  %v1237_v14 = vadd.f32 %v2095_v17, %v1166_v8 }
 0x14c   : > { %v1300_v12 = vmul.f32 0.2, %v1236_v6 }
 0x14d   : > { %v1332_v16 = vmax.f32 %v1204_v5, %v1268_v11  ;;  %v1269_v19 = vmul.f32 0.2, %v1205_v13  ;;  %v1301_v20 = vmul.f32 0.2, %v1237_v14 }
 0x14e   : > { %v1364_v18 = vmax.f32 %v1236_v6, %v1300_v12  ;;  %v921_v21 = vpop.f32.mrb[32].mxu0  ;;  %v1049_v22 = vpop.f32.mrb[32].mxu1 }
 0x14f   : > { %1397 = vst.msk [vmem:[%s2110_s9 + $0x70] sm:$0xff] %vm1382_vm2, %v1332_v16  ;;  %v1333_v23 = vmax.f32 %v1205_v13, %v1269_v19  ;;  %v1365_v24 = vmax.f32 %v1237_v14, %v1301_v20  ;;  %v1135_v25 = vmul.f32 %v2090_v15, %v921_v21  ;;  %v1167_v26 = vmul.f32 %v2090_v15, %v1049_v22  ;;  %v923_v27 = vpop.f32.mrb[33].mxu0  ;;  %v1051_v28 = vpop.f32.mrb[33].mxu1 }
 0x150   : > { %1429 = vst.msk [vmem:[%s2110_s9 + $0x170] sm:$0xff] %vm1382_vm2, %v1364_v18  ;;  %v924_v29 = vpop.f32.mrb[34].mxu0  ;;  %v1052_v30 = vpop.f32.mrb[34].mxu1 }
 0x151   : > { %1398 = vst.msk [vmem:[%s2110_s9 + $0x78] sm:$0xff] %vm1382_vm2, %v1333_v23  ;;  %1430 = vst.msk [vmem:[%s2110_s9 + $0x178] sm:$0xff] %vm1382_vm2, %v1365_v24  ;;  %v1206_v31 = vadd.f32 %v2095_v17, %v1135_v25  ;;  %v1238_v32 = vadd.f32 %v2095_v17, %v1167_v26  ;;  %v1136_v33 = vmul.f32 %v2090_v15, %v924_v29  ;;  %v926_v35 = vpop.f32.mrb[35].mxu0  ;;  %v1054_v36 = vpop.f32.mrb[35].mxu1 }
 0x152   : > { %v1168_v34 = vmul.f32 %v2090_v15, %v1052_v30 }
 0x153   : > { %v1270_v37 = vmul.f32 0.2, %v1206_v31  ;;  %v1302_v38 = vmul.f32 0.2, %v1238_v32  ;;  %v1207_v39 = vadd.f32 %v2095_v17, %v1136_v33 }
 0x154   : > { %v1239_v40 = vadd.f32 %v2095_v17, %v1168_v34 }
 0x155   : > { %v1334_v41 = vmax.f32 %v1206_v31, %v1270_v37  ;;  %v1366_v42 = vmax.f32 %v1238_v32, %v1302_v38  ;;  %v1271_v43 = vmul.f32 0.2, %v1207_v39 }
 0x156   : > { %v1303_v44 = vmul.f32 0.2, %v1239_v40  ;;  %v929_v45 = vpop.f32.mrb[36].mxu0  ;;  %v1057_v46 = vpop.f32.mrb[36].mxu1 }
 0x157   : > { %1399 = vst.msk [vmem:[%s2110_s9 + $0x80] sm:$0xff] %vm1382_vm2, %v1334_v41  ;;  %1431 = vst.msk [vmem:[%s2110_s9 + $0x180] sm:$0xff] %vm1382_vm2, %v1366_v42  ;;  %v1335_v47 = vmax.f32 %v1207_v39, %v1271_v43  ;;  %v1137_v49 = vmul.f32 %v2090_v15, %v929_v45  ;;  %v1169_v50 = vmul.f32 %v2090_v15, %v1057_v46  ;;  %v931_v51 = vpop.f32.mrb[37].mxu0  ;;  %v1059_v52 = vpop.f32.mrb[37].mxu1 }
 0x158   : > { %v1367_v48 = vmax.f32 %v1239_v40, %v1303_v44  ;;  %v932_v53 = vpop.f32.mrb[38].mxu0  ;;  %v1060_v54 = vpop.f32.mrb[38].mxu1 }
 0x159   : > { %1400 = vst.msk [vmem:[%s2110_s9 + $0x88] sm:$0xff] %vm1382_vm2, %v1335_v47  ;;  %v1208_v55 = vadd.f32 %v2095_v17, %v1137_v49  ;;  %v1240_v56 = vadd.f32 %v2095_v17, %v1169_v50  ;;  %v1138_v57 = vmul.f32 %v2090_v15, %v932_v53  ;;  %v1170_v58 = vmul.f32 %v2090_v15, %v1060_v54  ;;  %v934_v59 = vpop.f32.mrb[39].mxu0  ;;  %v1062_v60 = vpop.f32.mrb[39].mxu1 }
 0x15a   : > { %1432 = vst.msk [vmem:[%s2110_s9 + $0x188] sm:$0xff] %vm1382_vm2, %v1367_v48 }
 0x15b   : > { %v1272_v61 = vmul.f32 0.2, %v1208_v55  ;;  %v1304_v62 = vmul.f32 0.2, %v1240_v56  ;;  %v1209_v63 = vadd.f32 %v2095_v17, %v1138_v57  ;;  %v1241_v0 = vadd.f32 %v2095_v17, %v1170_v58 }
 0x15d   : > { %v1336_v1 = vmax.f32 %v1208_v55, %v1272_v61  ;;  %v1368_v2 = vmax.f32 %v1240_v56, %v1304_v62  ;;  %v1273_v3 = vmul.f32 0.2, %v1209_v63  ;;  %v1305_v4 = vmul.f32 0.2, %v1241_v0 }
 0x15e   : > { %v937_v5 = vpop.f32.mrb[40].mxu0  ;;  %v1065_v6 = vpop.f32.mrb[40].mxu1 }
 0x15f   : > { %1401 = vst.msk [vmem:[%s2110_s9 + $0x90] sm:$0xff] %vm1382_vm2, %v1336_v1  ;;  %1433 = vst.msk [vmem:[%s2110_s9 + $0x190] sm:$0xff] %vm1382_vm2, %v1368_v2  ;;  %v1337_v7 = vmax.f32 %v1209_v63, %v1273_v3  ;;  %v1369_v8 = vmax.f32 %v1241_v0, %v1305_v4  ;;  %v1139_v9 = vmul.f32 %v2090_v15, %v937_v5  ;;  %v939_v11 = vpop.f32.mrb[41].mxu0  ;;  %v1067_v12 = vpop.f32.mrb[41].mxu1 }
 0x160   : > { %v1171_v10 = vmul.f32 %v2090_v15, %v1065_v6  ;;  %v940_v13 = vpop.f32.mrb[42].mxu0  ;;  %v1068_v14 = vpop.f32.mrb[42].mxu1 }
 0x161   : > { %1402 = vst.msk [vmem:[%s2110_s9 + $0x98] sm:$0xff] %vm1382_vm2, %v1337_v7  ;;  %1434 = vst.msk [vmem:[%s2110_s9 + $0x198] sm:$0xff] %vm1382_vm2, %v1369_v8  ;;  %v1210_v16 = vadd.f32 %v2095_v17, %v1139_v9  ;;  %v1140_v19 = vmul.f32 %v2090_v15, %v940_v13  ;;  %v1172_v20 = vmul.f32 %v2090_v15, %v1068_v14  ;;  %v942_v21 = vpop.f32.mrb[43].mxu0  ;;  %v1070_v22 = vpop.f32.mrb[43].mxu1 }
 0x162   : > { %v1242_v18 = vadd.f32 %v2095_v17, %v1171_v10 }
 0x163   : > { %v1274_v23 = vmul.f32 0.2, %v1210_v16  ;;  %v1211_v25 = vadd.f32 %v2095_v17, %v1140_v19  ;;  %v1243_v26 = vadd.f32 %v2095_v17, %v1172_v20 }
 0x164   : > { %v1306_v24 = vmul.f32 0.2, %v1242_v18 }
 0x165   : > { %v1338_v27 = vmax.f32 %v1210_v16, %v1274_v23  ;;  %v1275_v29 = vmul.f32 0.2, %v1211_v25  ;;  %v1307_v30 = vmul.f32 0.2, %v1243_v26 }
 0x166   : > { %v1370_v28 = vmax.f32 %v1242_v18, %v1306_v24  ;;  %v945_v31 = vpop.f32.mrb[44].mxu0  ;;  %v1073_v32 = vpop.f32.mrb[44].mxu1 }
 0x167   : > { %1403 = vst.msk [vmem:[%s2110_s9 + $0xa0] sm:$0xff] %vm1382_vm2, %v1338_v27  ;;  %v1339_v33 = vmax.f32 %v1211_v25, %v1275_v29  ;;  %v1371_v34 = vmax.f32 %v1243_v26, %v1307_v30  ;;  %v1141_v35 = vmul.f32 %v2090_v15, %v945_v31  ;;  %v1173_v36 = vmul.f32 %v2090_v15, %v1073_v32  ;;  %v947_v37 = vpop.f32.mrb[45].mxu0  ;;  %v1075_v38 = vpop.f32.mrb[45].mxu1 }
 0x168   : > { %1435 = vst.msk [vmem:[%s2110_s9 + $0x1a0] sm:$0xff] %vm1382_vm2, %v1370_v28  ;;  %v948_v39 = vpop.f32.mrb[46].mxu0  ;;  %v1076_v40 = vpop.f32.mrb[46].mxu1 }
 0x169   : > { %1404 = vst.msk [vmem:[%s2110_s9 + $0xa8] sm:$0xff] %vm1382_vm2, %v1339_v33  ;;  %1436 = vst.msk [vmem:[%s2110_s9 + $0x1a8] sm:$0xff] %vm1382_vm2, %v1371_v34  ;;  %v1212_v41 = vadd.f32 %v2095_v17, %v1141_v35  ;;  %v1244_v42 = vadd.f32 %v2095_v17, %v1173_v36  ;;  %v1142_v43 = vmul.f32 %v2090_v15, %v948_v39  ;;  %v950_v45 = vpop.f32.mrb[47].mxu0  ;;  %v1078_v46 = vpop.f32.mrb[47].mxu1 }
 0x16a   : > { %v1174_v44 = vmul.f32 %v2090_v15, %v1076_v40 }
 0x16b   : > { %v1276_v47 = vmul.f32 0.2, %v1212_v41  ;;  %v1308_v48 = vmul.f32 0.2, %v1244_v42  ;;  %v1213_v49 = vadd.f32 %v2095_v17, %v1142_v43 }
 0x16c   : > { %v1245_v50 = vadd.f32 %v2095_v17, %v1174_v44 }
 0x16d   : > { %v1340_v51 = vmax.f32 %v1212_v41, %v1276_v47  ;;  %v1372_v52 = vmax.f32 %v1244_v42, %v1308_v48  ;;  %v1277_v53 = vmul.f32 0.2, %v1213_v49 }
 0x16e   : > { %v1309_v54 = vmul.f32 0.2, %v1245_v50  ;;  %v953_v55 = vpop.f32.mrb[48].mxu0  ;;  %v1081_v56 = vpop.f32.mrb[48].mxu1 }
 0x16f   : > { %1405 = vst.msk [vmem:[%s2110_s9 + $0xb0] sm:$0xff] %vm1382_vm2, %v1340_v51  ;;  %1437 = vst.msk [vmem:[%s2110_s9 + $0x1b0] sm:$0xff] %vm1382_vm2, %v1372_v52  ;;  %v1341_v57 = vmax.f32 %v1213_v49, %v1277_v53  ;;  %v1143_v59 = vmul.f32 %v2090_v15, %v953_v55  ;;  %v1175_v60 = vmul.f32 %v2090_v15, %v1081_v56  ;;  %v955_v61 = vpop.f32.mrb[49].mxu0  ;;  %v1083_v62 = vpop.f32.mrb[49].mxu1 }
 0x170   : > { %v1373_v58 = vmax.f32 %v1245_v50, %v1309_v54  ;;  %v956_v63 = vpop.f32.mrb[50].mxu0  ;;  %v1084_v0 = vpop.f32.mrb[50].mxu1 }
 0x171   : > { %1406 = vst.msk [vmem:[%s2110_s9 + $0xb8] sm:$0xff] %vm1382_vm2, %v1341_v57  ;;  %v1214_v1 = vadd.f32 %v2095_v17, %v1143_v59  ;;  %v1246_v2 = vadd.f32 %v2095_v17, %v1175_v60  ;;  %v1144_v3 = vmul.f32 %v2090_v15, %v956_v63  ;;  %v1176_v4 = vmul.f32 %v2090_v15, %v1084_v0  ;;  %v958_v5 = vpop.f32.mrb[51].mxu0  ;;  %v1086_v6 = vpop.f32.mrb[51].mxu1 }
 0x172   : > { %1438 = vst.msk [vmem:[%s2110_s9 + $0x1b8] sm:$0xff] %vm1382_vm2, %v1373_v58 }
 0x173   : > { %v1278_v7 = vmul.f32 0.2, %v1214_v1  ;;  %v1310_v8 = vmul.f32 0.2, %v1246_v2  ;;  %v1215_v9 = vadd.f32 %v2095_v17, %v1144_v3  ;;  %v1247_v10 = vadd.f32 %v2095_v17, %v1176_v4 }
 0x175   : > { %v1342_v11 = vmax.f32 %v1214_v1, %v1278_v7  ;;  %v1374_v12 = vmax.f32 %v1246_v2, %v1310_v8  ;;  %v1279_v13 = vmul.f32 0.2, %v1215_v9  ;;  %v1311_v14 = vmul.f32 0.2, %v1247_v10 }
 0x176   : > { %v961_v16 = vpop.f32.mrb[52].mxu0  ;;  %v1089_v18 = vpop.f32.mrb[52].mxu1 }
 0x177   : > { %1407 = vst.msk [vmem:[%s2110_s9 + $0xc0] sm:$0xff] %vm1382_vm2, %v1342_v11  ;;  %1439 = vst.msk [vmem:[%s2110_s9 + $0x1c0] sm:$0xff] %vm1382_vm2, %v1374_v12  ;;  %v1343_v19 = vmax.f32 %v1215_v9, %v1279_v13  ;;  %v1375_v20 = vmax.f32 %v1247_v10, %v1311_v14  ;;  %v1145_v21 = vmul.f32 %v2090_v15, %v961_v16  ;;  %v963_v23 = vpop.f32.mrb[53].mxu0  ;;  %v1091_v24 = vpop.f32.mrb[53].mxu1 }
 0x178   : > { %v1177_v22 = vmul.f32 %v2090_v15, %v1089_v18  ;;  %v964_v25 = vpop.f32.mrb[54].mxu0  ;;  %v1092_v26 = vpop.f32.mrb[54].mxu1 }
 0x179   : > { %1408 = vst.msk [vmem:[%s2110_s9 + $0xc8] sm:$0xff] %vm1382_vm2, %v1343_v19  ;;  %1440 = vst.msk [vmem:[%s2110_s9 + $0x1c8] sm:$0xff] %vm1382_vm2, %v1375_v20  ;;  %v1216_v27 = vadd.f32 %v2095_v17, %v1145_v21  ;;  %v1146_v29 = vmul.f32 %v2090_v15, %v964_v25  ;;  %v1178_v30 = vmul.f32 %v2090_v15, %v1092_v26  ;;  %v966_v31 = vpop.f32.mrb[55].mxu0  ;;  %v1094_v32 = vpop.f32.mrb[55].mxu1 }
 0x17a   : > { %v1248_v28 = vadd.f32 %v2095_v17, %v1177_v22 }
 0x17b   : > { %v1280_v33 = vmul.f32 0.2, %v1216_v27  ;;  %v1217_v35 = vadd.f32 %v2095_v17, %v1146_v29  ;;  %v1249_v36 = vadd.f32 %v2095_v17, %v1178_v30 }
 0x17c   : > { %v1312_v34 = vmul.f32 0.2, %v1248_v28 }
 0x17d   : > { %v1344_v37 = vmax.f32 %v1216_v27, %v1280_v33  ;;  %v1281_v39 = vmul.f32 0.2, %v1217_v35  ;;  %v1313_v40 = vmul.f32 0.2, %v1249_v36 }
 0x17e   : > { %v1376_v38 = vmax.f32 %v1248_v28, %v1312_v34  ;;  %v969_v41 = vpop.f32.mrb[56].mxu0  ;;  %v1097_v42 = vpop.f32.mrb[56].mxu1 }
 0x17f   : > { %1409 = vst.msk [vmem:[%s2110_s9 + $0xd0] sm:$0xff] %vm1382_vm2, %v1344_v37  ;;  %v1345_v43 = vmax.f32 %v1217_v35, %v1281_v39  ;;  %v1377_v44 = vmax.f32 %v1249_v36, %v1313_v40  ;;  %v1147_v45 = vmul.f32 %v2090_v15, %v969_v41  ;;  %v1179_v46 = vmul.f32 %v2090_v15, %v1097_v42  ;;  %v971_v47 = vpop.f32.mrb[57].mxu0  ;;  %v1099_v48 = vpop.f32.mrb[57].mxu1 }
 0x180   : > { %1441 = vst.msk [vmem:[%s2110_s9 + $0x1d0] sm:$0xff] %vm1382_vm2, %v1376_v38  ;;  %v972_v49 = vpop.f32.mrb[58].mxu0  ;;  %v1100_v50 = vpop.f32.mrb[58].mxu1 }
 0x181   : > { %1410 = vst.msk [vmem:[%s2110_s9 + $0xd8] sm:$0xff] %vm1382_vm2, %v1345_v43  ;;  %1442 = vst.msk [vmem:[%s2110_s9 + $0x1d8] sm:$0xff] %vm1382_vm2, %v1377_v44  ;;  %v1218_v51 = vadd.f32 %v2095_v17, %v1147_v45  ;;  %v1250_v52 = vadd.f32 %v2095_v17, %v1179_v46  ;;  %v1148_v53 = vmul.f32 %v2090_v15, %v972_v49  ;;  %v974_v55 = vpop.f32.mrb[59].mxu0  ;;  %v1102_v56 = vpop.f32.mrb[59].mxu1 }
 0x182   : > { %v1180_v54 = vmul.f32 %v2090_v15, %v1100_v50 }
 0x183   : > { %v1282_v57 = vmul.f32 0.2, %v1218_v51  ;;  %v1314_v58 = vmul.f32 0.2, %v1250_v52  ;;  %v1219_v59 = vadd.f32 %v2095_v17, %v1148_v53 }
 0x184   : > { %v1251_v60 = vadd.f32 %v2095_v17, %v1180_v54 }
 0x185   : > { %v1346_v61 = vmax.f32 %v1218_v51, %v1282_v57  ;;  %v1378_v62 = vmax.f32 %v1250_v52, %v1314_v58  ;;  %v1283_v63 = vmul.f32 0.2, %v1219_v59 }
 0x186   : > { %v1315_v0 = vmul.f32 0.2, %v1251_v60  ;;  %v977_v1 = vpop.f32.mrb[60].mxu0  ;;  %v1105_v2 = vpop.f32.mrb[60].mxu1 }
 0x187   : > { %1411 = vst.msk [vmem:[%s2110_s9 + $0xe0] sm:$0xff] %vm1382_vm2, %v1346_v61  ;;  %1443 = vst.msk [vmem:[%s2110_s9 + $0x1e0] sm:$0xff] %vm1382_vm2, %v1378_v62  ;;  %v1347_v3 = vmax.f32 %v1219_v59, %v1283_v63  ;;  %v1149_v5 = vmul.f32 %v2090_v15, %v977_v1  ;;  %v1181_v6 = vmul.f32 %v2090_v15, %v1105_v2  ;;  %v979_v7 = vpop.f32.mrb[61].mxu0  ;;  %v1107_v8 = vpop.f32.mrb[61].mxu1 }
 0x188   : > { %v1379_v4 = vmax.f32 %v1251_v60, %v1315_v0  ;;  %v980_v9 = vpop.f32.mrb[62].mxu0  ;;  %v1108_v10 = vpop.f32.mrb[62].mxu1 }
 0x189   : > { %1412 = vst.msk [vmem:[%s2110_s9 + $0xe8] sm:$0xff] %vm1382_vm2, %v1347_v3  ;;  %v1220_v11 = vadd.f32 %v2095_v17, %v1149_v5  ;;  %v1252_v12 = vadd.f32 %v2095_v17, %v1181_v6  ;;  %v1150_v13 = vmul.f32 %v2090_v15, %v980_v9  ;;  %v1182_v14 = vmul.f32 %v2090_v15, %v1108_v10  ;;  %v982_v16 = vpop.f32.mrb[63].mxu0  ;;  %v1110_v18 = vpop.f32.mrb[63].mxu1 }
 0x18a   : > { %1444 = vst.msk [vmem:[%s2110_s9 + $0x1e8] sm:$0xff] %vm1382_vm2, %v1379_v4 }
 0x18b   : > { %v1284_v19 = vmul.f32 0.2, %v1220_v11  ;;  %v1316_v20 = vmul.f32 0.2, %v1252_v12  ;;  %v1221_v21 = vadd.f32 %v2095_v17, %v1150_v13  ;;  %v1253_v22 = vadd.f32 %v2095_v17, %v1182_v14 }
 0x18d   : > { %v1348_v23 = vmax.f32 %v1220_v11, %v1284_v19  ;;  %v1380_v24 = vmax.f32 %v1252_v12, %v1316_v20  ;;  %v1285_v25 = vmul.f32 0.2, %v1221_v21  ;;  %v1317_v26 = vmul.f32 0.2, %v1253_v22 }
 0x18f   : > { %1413 = vst.msk [vmem:[%s2110_s9 + $0xf0] sm:$0xff] %vm1382_vm2, %v1348_v23  ;;  %1445 = vst.msk [vmem:[%s2110_s9 + $0x1f0] sm:$0xff] %vm1382_vm2, %v1380_v24  ;;  %v1349_v27 = vmax.f32 %v1221_v21, %v1285_v25  ;;  %v1381_v28 = vmax.f32 %v1253_v22, %v1317_v26 }
 0x191   : > { %1414 = vst.msk [vmem:[%s2110_s9 + $0xf8] sm:$0xff] %vm1382_vm2, %v1349_v27  ;;  %1446 = vst.msk [vmem:[%s2110_s9 + $0x1f8] sm:$0xff] %vm1382_vm2, %v1381_v28 }
 0x192 PF: > { %s14_s17 = sadd.s32 1, %s1870_s17   ;;  %s2374_s15 = smov %s1866_s16 }
 0x193   : > { %p11_p5 = scmp.ge.s32.totalorder %s14_s17, 5   ;;  %s2375_s16 = smov %s2377_s18 }
 0x195   :  { %13 = sbr.rel (!%p11_p5) target bundleno = 2 (0x2), region = 75 }

</bundles_post_ra>
